<compile_context>
chip_gen: v6e
topology: v6e:2x2x1
jax: 0.10.0
libtpu: 0.0.40
codegen_flags: <defaults>
</compile_context>

<pallas_src>
import functools

import jax
import jax.numpy as jnp
from jax import lax
from jax.experimental import pallas as pl
from jax.experimental.pallas import tpu as pltpu


def _round_up(x, m):
    return ((x + m - 1) // m) * m


def _largest_aligned_divisor(hw128, cap):
    """Largest multiple of 128 that divides hw128 (itself a multiple of 128) and is <= cap."""
    m = hw128 // 128
    cap_b = max(1, cap // 128)
    best = 1
    d = 1
    while d * d <= m:
        if m % d == 0:
            for q in (d, m // d):
                if q <= cap_b and q > best:
                    best = q
        d += 1
    return best * 128


def _largest_divisor_leq(n, cap):
    cap = max(1, min(n, cap))
    for d in range(cap, 0, -1):
        if n % d == 0:
            return d
    return 1


def _conv1x1_kernel(x_ref, w_ref, b_ref, o_ref, *, use_mxu):
    # x_ref: (bN, C, t_hw)  w_ref: (E, C)  b_ref: (E, 1)  o_ref: (bN, E, t_hw)
    C = x_ref.shape[1]
    w = w_ref[...].astype(jnp.float32)   # (E, C) — stationary, tiny
    b = b_ref[...].astype(jnp.float32)   # (E, 1): lane broadcast is free

    for i in range(x_ref.shape[0]):      # static unroll over folded batch rows (bN small)
        x = x_ref[i].astype(jnp.float32)  # (C, t_hw)
        if use_mxu:
            # MXU contraction.  Explicit HIGHEST precision keeps full f32 numerics so results
            # don't silently change vs. the VPU branch (no implicit bf16 downcast).
            acc = jnp.dot(w, x, preferred_element_type=jnp.float32,
                          precision=lax.Precision.HIGHEST) + b
        else:
            # Tiny contraction (e.g. C=4) on v5e/v6e: C VPU FMAs per output vreg, f32
            # accumulation, no MXU push/pop latency.
            acc = b + w[:, 0:1] * x[0:1, :]
            for c in range(1, C):
                acc = acc + w[:, c:c + 1] * x[c:c + 1, :]
        o_ref[i] = acc.astype(o_ref.dtype)


@functools.partial(jax.jit, static_argnames=("tile_hw", "use_mxu"))
def audio_embedding_forward(x_nchw, weight, bias, *, tile_hw=16384, use_mxu=None):
    """x_nchw: (N, C, H, W); weight: (E, C) (squeezed 1x1 conv kernel); bias: (E,)."""
    N, C, H, W = x_nchw.shape
    E = weight.shape[0]
    HW = H * W

    # Generation-aware contraction-engine choice (decided at trace time).
    if use_mxu is None:
        kind = ""
        try:
            kind = jax.devices()[0].device_kind.lower()
        except Exception:
            pass
        use_mxu = (C > 8) or ("v7" in kind)

    # NCHW -> (N, C, H*W) is a contiguous reshape: no HBM round-trip transposes.
    x = x_nchw.reshape(N, C, HW)

    # ---- Spatial tiling: lane-dense tiles, pad-free whenever HW is 128-aligned ----
    t_cap = max(128, (int(tile_hw) // 128) * 128)
    hw128 = _round_up(HW, 128)
    if hw128 <= t_cap:
        t_hw = hw128
        n_hw = 1
    else:
        t_hw = _largest_aligned_divisor(hw128, t_cap)
        if t_hw < 1024:
            # Awkward factorization (e.g. prime*128): accept a padded tail rather than
            # degenerating to 128-wide, overhead-bound tiles.
            t_hw = t_cap
        n_hw = pl.cdiv(hw128, t_hw)

    # If a single batch row would be a single grid step, split the spatial axis in two so a
    # 2-TensorCore chip (v7x) has parallel work.  No-op / harmless on v5e/v6e.
    if N == 1 and n_hw == 1 and hw128 >= 256 and (hw128 // 128) % 2 == 0:
        t_hw = hw128 // 2
        n_hw = 2

    hw_padded = n_hw * t_hw
    if hw_padded != HW:
        x = jnp.pad(x, ((0, 0), (0, 0), (0, hw_padded - HW)))

    # ---- Batch folding: amortize per-grid-step overhead when spatial tiles are small ----
    itemsize = max(x.dtype.itemsize, 4)
    per_row_bytes = (C + E) * t_hw * itemsize
    bn_cap = max(1, int((8 * 1024 * 1024) // per_row_bytes))   # ~8 MiB of blocks per step
    bN = _largest_divisor_leq(N, bn_cap)
    if n_hw == 1 and bN == N and N > 1:
        # Keep >= 2 grid steps so both v7x TensorCores get work.
        bN = _largest_divisor_leq(N, max(1, N // 2))
    n_b = N // bN

    b_col = bias.reshape(E, 1)

    # Explicit VMEM limit: above v5e's 16 MiB scoped default, below v7x's 64 MiB physical.
    step_block_bytes = bN * (C + E) * t_hw * itemsize
    vmem_limit = int(min(48 * 1024 * 1024, max(32 * 1024 * 1024, 6 * step_block_bytes)))

    cost = pl.CostEstimate(
        flops=2 * N * C * E * hw_padded,
        transcendentals=0,
        bytes_accessed=(x.dtype.itemsize * N * (C + E) * hw_padded
                        + weight.dtype.itemsize * E * C
                        + bias.dtype.itemsize * E),
    )

    kernel = functools.partial(_conv1x1_kernel, use_mxu=use_mxu)
    out = pl.pallas_call(
        kernel,
        out_shape=jax.ShapeDtypeStruct((N, E, hw_padded), x_nchw.dtype),
        grid=(n_b, n_hw),
        in_specs=[
            pl.BlockSpec((bN, C, t_hw), lambda n, j: (n, 0, j)),  # x tile
            pl.BlockSpec((E, C), lambda n, j: (0, 0)),            # weight (stationary)
            pl.BlockSpec((E, 1), lambda n, j: (0, 0)),            # bias column
        ],
        out_specs=pl.BlockSpec((bN, E, t_hw), lambda n, j: (n, 0, j)),
        compiler_params=pltpu.CompilerParams(
            dimension_semantics=("parallel", "parallel"),
            vmem_limit_bytes=vmem_limit,
        ),
        cost_estimate=cost,
    )(x, weight, b_col)

    # Drop spatial padding only when it exists (ragged HW), then restore NCHW output shape.
    if hw_padded != HW:
        out = out[:, :, :HW]
    return out.reshape(N, E, H, W)


if __name__ == "__main__":
    # Small shapes consistent with the module's forward.
    N, C, H, W = 2, 4, 16, 16   # batch, in_channels, spatial
    E = 32                      # embed_dim

    key = jax.random.PRNGKey(0)
    kx, kw, kb = jax.random.split(key, 3)

    x = jax.random.normal(kx, (N, C, H, W), dtype=jnp.float32)

    # Deterministic parameter init (PyTorch Conv2d default: uniform(-1/sqrt(C), 1/sqrt(C))).
    bound = 1.0 / jnp.sqrt(jnp.float32(C))
    weight = jax.random.uniform(kw, (E, C), minval=-bound, maxval=bound, dtype=jnp.float32)
    bias = jax.random.uniform(kb, (E,), minval=-bound, maxval=bound, dtype=jnp.float32)

    out = audio_embedding_forward(x, weight, bias)
    jax.block_until_ready(out)

    # Reference check against plain JAX (1x1 conv == einsum over channels + bias), in full f32.
    ref = jnp.einsum("nchw,ec->nehw", x, weight,
                     precision=lax.Precision.HIGHEST) + bias[None, :, None, None]
    assert out.shape == (N, E, H, W), out.shape
    assert jnp.allclose(out, ref, atol=1e-5, rtol=1e-5)

    # Also exercise the ragged-tail path (H*W not a multiple of 128).
    H2, W2 = 15, 15
    x2 = jax.random.normal(kx, (N, C, H2, W2), dtype=jnp.float32)
    out2 = audio_embedding_forward(x2, weight, bias)
    jax.block_until_ready(out2)
    ref2 = jnp.einsum("nchw,ec->nehw", x2, weight,
                      precision=lax.Precision.HIGHEST) + bias[None, :, None, None]
    assert out2.shape == (N, E, H2, W2), out2.shape
    assert jnp.allclose(out2, ref2, atol=1e-5, rtol=1e-5)

    print("KERNEL_OK")
</pallas_src>

<mosaic_0001>
module attributes {stable_mosaic.version = 11 : i64} {
  func.func @_conv1x1_kernel(%arg0: i32, %arg1: i32, %arg2: memref<1x4x256xf32, #tpu.memory_space<vmem>>, %arg3: memref<32x4xf32, #tpu.memory_space<vmem>>, %arg4: memref<32x1xf32, #tpu.memory_space<vmem>>, %arg5: memref<1x32x256xf32, #tpu.memory_space<vmem>>) attributes {dimension_semantics = [#tpu.dimension_semantics<parallel>, #tpu.dimension_semantics<parallel>], iteration_bounds = array<i64: 2, 1>, scalar_prefetch = 0 : i64, scratch_operands = 0 : i64, tpu.core_type = #tpu.core_type<tc>, window_params = [{transform_indices = @transform_0, window_bounds = array<i64: 1, 4, 256>}, {pipeline_mode = #tpu.pipeline_mode<synchronous>, transform_indices = @transform_1, window_bounds = array<i64: 32, 4>}, {pipeline_mode = #tpu.pipeline_mode<synchronous>, transform_indices = @transform_2, window_bounds = array<i64: 32, 1>}, {transform_indices = @transform_3, window_bounds = array<i64: 1, 32, 256>}]} {
    %c0 = arith.constant 0 : index
    %c0_0 = arith.constant 0 : index
    %0 = vector.load %arg3[%c0, %c0_0] : memref<32x4xf32, #tpu.memory_space<vmem>>, vector<32x4xf32>
    %c0_1 = arith.constant 0 : index
    %c0_2 = arith.constant 0 : index
    %1 = vector.load %arg4[%c0_1, %c0_2] : memref<32x1xf32, #tpu.memory_space<vmem>>, vector<32x1xf32>
    %c0_3 = arith.constant 0 : index
    %c0_4 = arith.constant 0 : index
    %c0_5 = arith.constant 0 : index
    %2 = vector.load %arg2[%c0_3, %c0_4, %c0_5] : memref<1x4x256xf32, #tpu.memory_space<vmem>>, vector<1x4x256xf32>
    %3 = vector.shape_cast %2 : vector<1x4x256xf32> to vector<4x256xf32>
    %4 = vector.extract_strided_slice %0 {offsets = [0, 0], sizes = [32, 1], strides = [1, 1]} : vector<32x4xf32> to vector<32x1xf32>
    %5 = vector.extract_strided_slice %3 {offsets = [0, 0], sizes = [1, 256], strides = [1, 1]} : vector<4x256xf32> to vector<1x256xf32>
    %6 = vector.broadcast %4 : vector<32x1xf32> to vector<32x256xf32>
    %7 = vector.broadcast %5 : vector<1x256xf32> to vector<32x256xf32>
    %8 = arith.mulf %6, %7 : vector<32x256xf32>
    %9 = vector.broadcast %1 : vector<32x1xf32> to vector<32x256xf32>
    %10 = arith.addf %9, %8 : vector<32x256xf32>
    %11 = vector.extract_strided_slice %0 {offsets = [0, 1], sizes = [32, 1], strides = [1, 1]} : vector<32x4xf32> to vector<32x1xf32>
    %12 = vector.extract_strided_slice %3 {offsets = [1, 0], sizes = [1, 256], strides = [1, 1]} : vector<4x256xf32> to vector<1x256xf32>
    %13 = vector.broadcast %11 : vector<32x1xf32> to vector<32x256xf32>
    %14 = vector.broadcast %12 : vector<1x256xf32> to vector<32x256xf32>
    %15 = arith.mulf %13, %14 : vector<32x256xf32>
    %16 = arith.addf %10, %15 : vector<32x256xf32>
    %17 = vector.extract_strided_slice %0 {offsets = [0, 2], sizes = [32, 1], strides = [1, 1]} : vector<32x4xf32> to vector<32x1xf32>
    %18 = vector.extract_strided_slice %3 {offsets = [2, 0], sizes = [1, 256], strides = [1, 1]} : vector<4x256xf32> to vector<1x256xf32>
    %19 = vector.broadcast %17 : vector<32x1xf32> to vector<32x256xf32>
    %20 = vector.broadcast %18 : vector<1x256xf32> to vector<32x256xf32>
    %21 = arith.mulf %19, %20 : vector<32x256xf32>
    %22 = arith.addf %16, %21 : vector<32x256xf32>
    %23 = vector.extract_strided_slice %0 {offsets = [0, 3], sizes = [32, 1], strides = [1, 1]} : vector<32x4xf32> to vector<32x1xf32>
    %24 = vector.extract_strided_slice %3 {offsets = [3, 0], sizes = [1, 256], strides = [1, 1]} : vector<4x256xf32> to vector<1x256xf32>
    %25 = vector.broadcast %23 : vector<32x1xf32> to vector<32x256xf32>
    %26 = vector.broadcast %24 : vector<1x256xf32> to vector<32x256xf32>
    %27 = arith.mulf %25, %26 : vector<32x256xf32>
    %28 = arith.addf %22, %27 : vector<32x256xf32>
    %c0_6 = arith.constant 0 : index
    %c0_7 = arith.constant 0 : index
    %c0_8 = arith.constant 0 : index
    %29 = vector.load %arg5[%c0_6, %c0_7, %c0_8] : memref<1x32x256xf32, #tpu.memory_space<vmem>>, vector<1x32x256xf32>
    %30 = vector.shape_cast %29 : vector<1x32x256xf32> to vector<32x256xf32>
    %31 = vector.shape_cast %28 : vector<32x256xf32> to vector<1x32x256xf32>
    tpu.vector_store %arg5[%c0_6, %c0_7, %c0_8], %31 {strides = array<i32>} : memref<1x32x256xf32, #tpu.memory_space<vmem>>, vector<1x32x256xf32>,
    return
  }
  func.func @transform_0(%arg0: i32, %arg1: i32) -> (i32, i32, i32) {
    %c0_i32 = arith.constant 0 : i32
    %c0_i32_0 = arith.constant 0 : i32
    return %arg0, %c0_i32, %arg1 : i32, i32, i32
  }
  func.func @transform_1(%arg0: i32, %arg1: i32) -> (i32, i32) {
    %c0_i32 = arith.constant 0 : i32
    %c0_i32_0 = arith.constant 0 : i32
    %c0_i32_1 = arith.constant 0 : i32
    return %c0_i32, %c0_i32_0 : i32, i32
  }
  func.func @transform_2(%arg0: i32, %arg1: i32) -> (i32, i32) {
    %c0_i32 = arith.constant 0 : i32
    %c0_i32_0 = arith.constant 0 : i32
    %c0_i32_1 = arith.constant 0 : i32
    return %c0_i32, %c0_i32_0 : i32, i32
  }
  func.func @transform_3(%arg0: i32, %arg1: i32) -> (i32, i32, i32) {
    %c0_i32 = arith.constant 0 : i32
    %c0_i32_0 = arith.constant 0 : i32
    return %arg0, %c0_i32, %arg1 : i32, i32, i32
  }
}

</mosaic_0001>

<bundles_post_ra>
// kernel: audio_embedding_forward.1
= control target key start
LH: loop header
LB: loop body
LE: loop exit
PB: predicated region body
PF: predicated region fallthrough
CT: control target
= control target key end

     0   :  { %s636_s12 = smov 0   ;;  %s638_s13 = smov 0   ;;  %s751_s0 = inlined_call_operand.vmem [shape: f32[2,4,256], index: 0, kind: input, shape index: {}]   ;;  %s752_s1 = inlined_call_operand.vmem [shape: f32[32,4], index: 1, kind: input, shape index: {}]   ;;  %s753_s2 = inlined_call_operand.vmem [shape: f32[32,1], index: 2, kind: input, shape index: {}]   ;;  %s754_s3 = inlined_call_operand.vmem [shape: f32[2,32,256], index: 3, kind: output, shape index: {}]  }
   0x1   :  { %s640_s14 = smov 0  }
   0x2 LB: > { %s25_s15 = sadd.s32 1, %s606_s13  ;;  %p543_p0 = scmp.ge.s32.totalorder %s610_s14, 1  ;;  %s610_s14 = sphi %s640_s14, %s13_s14   ;;  %s606_s13 = sphi %s638_s13, %s756_s13   ;;  %s602_s12 = sphi %s636_s12, %s755_s12  }
   0x3   : > { %p27_p1 = scmp.ge.s32.totalorder %s25_s15, 2  ;;  %p158_p2 = scmp.lt.s32.totalorder %s610_s14, 3 }
   0x5   : > { %s758_s15 = smov (%p27_p1, %s25_s15), 0  ;;  %p159_p3 = pnand %p543_p0, %p158_p2 }
   0x6   : > { %p191_p4 = scmp.lt.s32.totalorder (!%p159_p3), %s602_s12, 1 }
   0x7   : > { %162 = sbr.rel (%p159_p3) target bundleno = 186 (0xba), region = 32 }
   0xc   : > { %v212_v0 = vld [vmem:[%s752_s1 + $0x10] sm:$0xff]  ;;  %v210_v1 = vld [vmem:[%s752_s1] sm:$0xff]  ;;  %v612_v2 = vmov 0   ;;  %v213_v3 = vld [vmem:[%s752_s1 + $0x18] sm:$0xff]  ;;  %v613_v9 = vmov 1   ;;  %v614_v10 = vmov 2   ;;  %v240_v16 = vlaneseq }
   0xd   : > { %581 = vset.pattern.permute.xlu1 %v612_v2  ;;  %580 = vset.pattern.permute.xlu0 %v612_v2  ;;  %v211_v4 = vld [vmem:[%s752_s1 + $0x8] sm:$0xff]  ;;  %v214_v6 = vld [vmem:[%s753_s2] sm:$0xff]  ;;  %v217_v7 = vld [vmem:[%s753_s2 + $0x18] sm:$0xff]  ;;  %v615_v11 = vmov 3   ;;  %s760_s12 = smov (!%p191_p4, %s602_s12), 1 }
   0xe   : > { %231 = vperm.xlu1 %581, %v212_v0   ;;  %221 = vperm.xlu0 %580, %v210_v1   ;;  %v215_v5 = vld [vmem:[%s753_s2 + $0x8] sm:$0xff]  ;;  %v216_v8 = vld [vmem:[%s753_s2 + $0x10] sm:$0xff]  ;;  %s550_s5 = sshll.u32 %s760_s12, 3  ;;  %v241_v19 = vshrl.u32 %v240_v16, 7  ;;  %s551_s9 = sshll.u32 %s760_s12, 6 }
   0xf   : > { %s198_s8 = scalar_lea.vmem %s751_s0, %s550_s5  ;;  %s714_s16 = scalar_lea.vmem %s754_s3, %s551_s9 }
  0x10   : > { %v242_v22 = vsub.s32 0, %v241_v19  ;;  %v246_v23 = vsub.s32 4, %v241_v19  ;;  %v312_v24 = vsub.s32 1, %v241_v19  ;;  %v316_v25 = vsub.s32 5, %v241_v19  ;;  %v218_v26 = vld [vmem:[%s198_s8] sm:$0xff] }
  0x11   : > { %v362_v27 = vsub.s32 2, %v241_v19  ;;  %v366_v28 = vsub.s32 6, %v241_v19  ;;  %v412_v35 = vsub.s32 3, %v241_v19  ;;  %v416_v36 = vsub.s32 7, %v241_v19 }
  0x12   : > { %236 = vperm.xlu1 %581, %v213_v3   ;;  %226 = vperm.xlu0 %580, %v211_v4   ;;  %v243_v31 = vrot.slane %v218_v26, %v242_v22  ;;  %v247_v32 = vrot.slane %v218_v26, %v246_v23  ;;  %v313_v33 = vrot.slane %v218_v26, %v312_v24 }
  0x13   : > { %v317_v34 = vrot.slane %v218_v26, %v316_v25  ;;  %v363_v37 = vrot.slane %v218_v26, %v362_v27  ;;  %v367_v38 = vrot.slane %v218_v26, %v366_v28  ;;  %v413_v45 = vrot.slane %v218_v26, %v412_v35 }
  0x14   : > { %v253_v41 = vrot.slane %v243_v31, %v242_v22  ;;  %v257_v42 = vrot.slane %v247_v32, %v242_v22  ;;  %v323_v43 = vrot.slane %v313_v33, %v312_v24  ;;  %v417_v46 = vrot.slane %v218_v26, %v416_v36 }
  0x15   : > { %v327_v44 = vrot.slane %v317_v34, %v312_v24  ;;  %v696_v49 = vrot.slane %v363_v37, %v362_v27  ;;  %v698_v50 = vrot.slane %v367_v38, %v362_v27  ;;  %v700_v55 = vrot.slane %v413_v45, %v412_v35 }
  0x16   : > { %273 = vperm.xlu1 %581, %v215_v5   ;;  %268 = vperm.xlu0 %580, %v214_v6   ;;  %v702_v56 = vrot.slane %v417_v46, %v412_v35 }
  0x1a   : > { %283 = vperm.xlu1 %581, %v217_v7   ;;  %278 = vperm.xlu0 %580, %v216_v8  }
  0x1e   : > { %583 = vset.pattern.permute.xlu1 %v613_v9  ;;  %582 = vset.pattern.permute.xlu0 %v613_v9 }
  0x1f   : > { %299 = vperm.xlu1 %583, %v211_v4   ;;  %295 = vperm.xlu0 %582, %v210_v1  }
  0x23   : > { %303 = vperm.xlu1 %583, %v212_v0   ;;  %307 = vperm.xlu0 %582, %v213_v3  }
  0x27   : > { %584 = vset.pattern.permute.xlu1 %v614_v10  ;;  %585 = vset.pattern.permute.xlu0 %v614_v10 }
  0x28   : > { %345 = vperm.xlu1 %584, %v210_v1   ;;  %349 = vperm.xlu0 %585, %v211_v4  }
  0x2c   : > { %353 = vperm.xlu1 %584, %v212_v0   ;;  %586 = vset.pattern.permute.xlu0 %v615_v11 }
  0x2d   : > { %395 = vperm.xlu0 %586, %v210_v1  }
  0x30   : > { %357 = vperm.xlu1 %584, %v213_v3  }
  0x31   : > { %407 = vperm.xlu0 %586, %v213_v3  }
  0x34   : > { %587 = vset.pattern.permute.xlu1 %v615_v11 }
  0x35   : > { %399 = vperm.xlu1 %587, %v211_v4  }
  0x39   : > { %403 = vperm.xlu1 %587, %v212_v0  }
  0x89   : > { %v680_v12 = vpop.permute.xlu1 %231  ;;  %v222_v13 = vpop.permute.xlu0 %221 }
  0x8a   : > { %v258_v47 = vmul.f32 %v253_v41, %v222_v13  ;;  %v259_v48 = vmul.f32 %v257_v42, %v222_v13 }
  0x8d   : > { %v237_v14 = vpop.permute.xlu1 %236  ;;  %v227_v15 = vpop.permute.xlu0 %226 }
  0x8e   : > { %v264_v61 = vmul.f32 %v253_v41, %v237_v14  ;;  %v265_v62 = vmul.f32 %v257_v42, %v237_v14  ;;  %v260_v63 = vmul.f32 %v253_v41, %v227_v15  ;;  %v261_v0 = vmul.f32 %v257_v42, %v227_v15 }
  0x91   : > { %v686_v17 = vpop.permute.xlu1 %273  ;;  %v269_v18 = vpop.permute.xlu0 %268 }
  0x92   : > { %v286_v57 = vadd.f32 %v269_v18, %v258_v47  ;;  %v287_v58 = vadd.f32 %v269_v18, %v259_v48  ;;  %v288_v16 = vadd.f32 %v686_v17, %v260_v63  ;;  %v289_v14 = vadd.f32 %v686_v17, %v261_v0 }
  0x95   : > { %v284_v20 = vpop.permute.xlu1 %283  ;;  %v692_v21 = vpop.permute.xlu0 %278 }
  0x96   : > { %v292_v6 = vadd.f32 %v284_v20, %v264_v61  ;;  %v293_v7 = vadd.f32 %v284_v20, %v265_v62 }
  0x9a   : > { %v300_v29 = vpop.permute.xlu1 %299  ;;  %v296_v30 = vpop.permute.xlu0 %295 }
  0x9b   : > { %v328_v51 = vmul.f32 %v323_v43, %v296_v30  ;;  %v329_v52 = vmul.f32 %v327_v44, %v296_v30  ;;  %v330_v15 = vmul.f32 %v323_v43, %v300_v29  ;;  %v331_v18 = vmul.f32 %v327_v44, %v300_v29 }
  0x9c   : > { %v262_v29 = vmul.f32 %v253_v41, %v680_v12  ;;  %v263_v30 = vmul.f32 %v257_v42, %v680_v12 }
  0x9d   : > { %v336_v1 = vadd.f32 %v328_v51, %v286_v57  ;;  %v337_v2 = vadd.f32 %v329_v52, %v287_v58  ;;  %v338_v33 = vadd.f32 %v330_v15, %v288_v16  ;;  %v339_v34 = vadd.f32 %v331_v18, %v289_v14 }
  0x9e   : > { %v694_v39 = vpop.permute.xlu1 %303  ;;  %v308_v40 = vpop.permute.xlu0 %307  ;;  %v290_v37 = vadd.f32 %v692_v21, %v262_v29  ;;  %v291_v38 = vadd.f32 %v692_v21, %v263_v30 }
  0x9f   : > { %v334_v3 = vmul.f32 %v323_v43, %v308_v40  ;;  %v335_v4 = vmul.f32 %v327_v44, %v308_v40  ;;  %v332_v40 = vmul.f32 %v323_v43, %v694_v39  ;;  %v333_v12 = vmul.f32 %v327_v44, %v694_v39 }
  0xa1   : > { %v342_v19 = vadd.f32 %v334_v3, %v292_v6  ;;  %v343_v20 = vadd.f32 %v335_v4, %v293_v7  ;;  %v340_v21 = vadd.f32 %v332_v40, %v290_v37  ;;  %v341_v39 = vadd.f32 %v333_v12, %v291_v38 }
  0xa3   : > { %v346_v53 = vpop.permute.xlu1 %345  ;;  %v350_v54 = vpop.permute.xlu0 %349 }
  0xa4   : > { %v378_v59 = vmul.f32 %v696_v49, %v346_v53  ;;  %v379_v60 = vmul.f32 %v698_v50, %v346_v53  ;;  %v380_v25 = vmul.f32 %v696_v49, %v350_v54  ;;  %v381_v26 = vmul.f32 %v698_v50, %v350_v54 }
  0xa6   : > { %v386_v9 = vadd.f32 %v378_v59, %v336_v1  ;;  %v387_v10 = vadd.f32 %v379_v60, %v337_v2  ;;  %v388_v41 = vadd.f32 %v380_v25, %v338_v33  ;;  %v389_v42 = vadd.f32 %v381_v26, %v339_v34 }
  0xa7   : > { %v354_v5 = vpop.permute.xlu1 %353 }
  0xa8   : > { %v396_v8 = vpop.permute.xlu0 %395  ;;  %v382_v48 = vmul.f32 %v696_v49, %v354_v5  ;;  %v383_v51 = vmul.f32 %v698_v50, %v354_v5 }
  0xa9   : > { %v428_v11 = vmul.f32 %v700_v55, %v396_v8  ;;  %v429_v13 = vmul.f32 %v702_v56, %v396_v8 }
  0xaa   : > { %v390_v57 = vadd.f32 %v382_v48, %v340_v21  ;;  %v391_v58 = vadd.f32 %v383_v51, %v341_v39 }
  0xab   : > { %v436_v22 = vadd.f32 %v428_v11, %v386_v9  ;;  %v437_v23 = vadd.f32 %v429_v13, %v387_v10  ;;  %v358_v24 = vpop.permute.xlu1 %357 }
  0xac   : > { %v384_v17 = vmul.f32 %v696_v49, %v358_v24  ;;  %v385_v27 = vmul.f32 %v698_v50, %v358_v24  ;;  %v408_v28 = vpop.permute.xlu0 %407 }
  0xad   : > { %444 = vst [vmem:[%s714_s16] sm:$0xff] %v436_v22  ;;  %445 = vst [vmem:[%s714_s16 + $0x8] sm:$0xff] %v437_v23  ;;  %v434_v31 = vmul.f32 %v700_v55, %v408_v28  ;;  %v435_v32 = vmul.f32 %v702_v56, %v408_v28 }
  0xae   : > { %v392_v35 = vadd.f32 %v384_v17, %v342_v19  ;;  %v393_v36 = vadd.f32 %v385_v27, %v343_v20 }
  0xb0   : > { %v442_v45 = vadd.f32 %v434_v31, %v392_v35  ;;  %v443_v46 = vadd.f32 %v435_v32, %v393_v36  ;;  %v400_v47 = vpop.permute.xlu1 %399 }
  0xb1   : > { %v430_v52 = vmul.f32 %v700_v55, %v400_v47  ;;  %v431_v53 = vmul.f32 %v702_v56, %v400_v47 }
  0xb2   : > { %450 = vst [vmem:[%s714_s16 + $0x30] sm:$0xff] %v442_v45  ;;  %451 = vst [vmem:[%s714_s16 + $0x38] sm:$0xff] %v443_v46 }
  0xb3   : > { %v438_v43 = vadd.f32 %v430_v52, %v388_v41  ;;  %v439_v44 = vadd.f32 %v431_v53, %v389_v42 }
  0xb4   : > { %v404_v54 = vpop.permute.xlu1 %403 }
  0xb5   : > { %446 = vst [vmem:[%s714_s16 + $0x10] sm:$0xff] %v438_v43  ;;  %447 = vst [vmem:[%s714_s16 + $0x18] sm:$0xff] %v439_v44  ;;  %v432_v49 = vmul.f32 %v700_v55, %v404_v54  ;;  %v433_v50 = vmul.f32 %v702_v56, %v404_v54 }
  0xb7   : > { %v440_v59 = vadd.f32 %v432_v49, %v390_v57  ;;  %v441_v60 = vadd.f32 %v433_v50, %v391_v58 }
  0xb9   : > { %448 = vst [vmem:[%s714_s16 + $0x20] sm:$0xff] %v440_v59  ;;  %449 = vst [vmem:[%s714_s16 + $0x28] sm:$0xff] %v441_v60 }
  0xba PF: > { %s13_s14 = sadd.s32 1, %s610_s14   ;;  %s755_s12 = smov %s606_s13 }
  0xbb   : > { %p10_p5 = scmp.ge.s32.totalorder %s13_s14, 4   ;;  %s756_s13 = smov %s758_s15 }
  0xbd   :  { %12 = sbr.rel (!%p10_p5) target bundleno = 2 (0x2), region = 62 }

</bundles_post_ra>
